<compile_context>
chip_gen: v7x
topology: tpu7x:2x2x1
jax: 0.10.0
libtpu: 0.0.40
codegen_flags: <defaults>
</compile_context>

<pallas_src>
import numpy as np
import jax
import jax.numpy as jnp
from jax.experimental import pallas as pl
from jax.experimental.pallas import tpu as pltpu  # noqa: F401  (kept for TPU backend availability)


def _copy_kernel(x_ref, o_ref):
    # Identity copy of the whole (single) tile == torch .contiguous() semantics.
    o_ref[...] = x_ref[...]


def contiguous_pallas(x):
    """Identity copy implemented as a single-block Pallas TPU kernel."""
    orig_shape = x.shape
    total = int(np.prod(orig_shape))

    # Pick a lane-dense 2-D factorization: last dim a multiple of 128 when
    # possible (free reshape of contiguous data in the wrapper).
    if total % 128 == 0:
        cols = 128
        while cols * 2 <= 1024 and total % (cols * 2) == 0:
            cols *= 2
        rows = total // cols
    else:
        rows, cols = 1, total  # fallback: full-extent block still legal
    x2 = x.reshape(rows, cols)

    out2 = pl.pallas_call(
        _copy_kernel,
        out_shape=jax.ShapeDtypeStruct((rows, cols), x.dtype),
        grid=(1,),
        # Single block == full array extent, so the (8,128) divisibility rule
        # is satisfied regardless of rows/cols.
        in_specs=[pl.BlockSpec((rows, cols), lambda i: (0, 0))],
        out_specs=pl.BlockSpec((rows, cols), lambda i: (0, 0)),
    )(x2)

    return out2.reshape(orig_shape)


if __name__ == "__main__":
    key = jax.random.PRNGKey(0)
    # Same shape the PyTorch module operates on: [1, 88, 2, 28, 28] (~552 KB).
    x70 = jax.random.normal(key, (1, 88, 2, 28, 28), dtype=jnp.float32)

    x71 = contiguous_pallas(x70)
    jax.block_until_ready(x71)

    assert x71.shape == x70.shape
    assert x71.dtype == x70.dtype
    assert bool(jnp.all(x71 == x70))  # identity semantics of .contiguous()
    print("KERNEL_OK")
</pallas_src>

<mosaic_0001>
module attributes {stable_mosaic.version = 11 : i64} {
  func.func @_copy_kernel(%arg0: i32, %arg1: memref<539x256xf32, #tpu.memory_space<vmem>>, %arg2: memref<539x256xf32, #tpu.memory_space<vmem>>) attributes {dimension_semantics = [#tpu.dimension_semantics<arbitrary>], iteration_bounds = array<i64: 1>, scalar_prefetch = 0 : i64, scratch_operands = 0 : i64, tpu.core_type = #tpu.core_type<tc>, window_params = [{pipeline_mode = #tpu.pipeline_mode<synchronous>, transform_indices = @transform_0, window_bounds = array<i64: 539, 256>}, {pipeline_mode = #tpu.pipeline_mode<synchronous>, transform_indices = @transform_1, window_bounds = array<i64: 539, 256>}]} {
    %c0 = arith.constant 0 : index
    %c0_0 = arith.constant 0 : index
    %0 = vector.load %arg1[%c0, %c0_0] : memref<539x256xf32, #tpu.memory_space<vmem>>, vector<539x256xf32>
    %c0_1 = arith.constant 0 : index
    %c0_2 = arith.constant 0 : index
    %1 = vector.load %arg2[%c0_1, %c0_2] : memref<539x256xf32, #tpu.memory_space<vmem>>, vector<539x256xf32>
    tpu.vector_store %arg2[%c0_1, %c0_2], %0 {strides = array<i32>} : memref<539x256xf32, #tpu.memory_space<vmem>>, vector<539x256xf32>,
    return
  }
  func.func @transform_0(%arg0: i32) -> (i32, i32) {
    %c0_i32 = arith.constant 0 : i32
    %c0_i32_0 = arith.constant 0 : i32
    %c0_i32_1 = arith.constant 0 : i32
    return %c0_i32, %c0_i32_0 : i32, i32
  }
  func.func @transform_1(%arg0: i32) -> (i32, i32) {
    %c0_i32 = arith.constant 0 : i32
    %c0_i32_0 = arith.constant 0 : i32
    %c0_i32_1 = arith.constant 0 : i32
    return %c0_i32, %c0_i32_0 : i32, i32
  }
}

</mosaic_0001>

<bundles_post_ra>
// kernel: tpu_custom_call.1
= control target key start
LH: loop header
LB: loop body
LE: loop exit
PB: predicated region body
PF: predicated region fallthrough
CT: control target
= control target key end

     0   :  { %6 = vsyncpa [#allocation3], 0  ;;  %s408_s0 = inlined_call_operand.hbm [shape: f32[539,256], index: 0, kind: input, shape index: {}]   ;;  %s409_s1 = inlined_call_operand.hbm [shape: f32[539,256], index: 1, kind: output, shape index: {}]  }
   0x1   :  { %7 = vsyncpa [#allocation4], 0  ;;  %s364_s6 = smov [#allocation2]   ;;  %s316_s10 = scalar_lea.hbm %s408_s0, 17408 }
   0x2   :  { %s13_s7 = sshll.u32 %s364_s6, 4  ;;  %p317_p0 = scmp.ne.s32.totalorder %s408_s0, %s316_s10  ;;  %s14_s7 = int_to_ptr.vmem [resolvable:$true] %s13_s7 }
   0x3   :  { %p320_p1 = scmp.lt.u32.totalorder %s316_s10, %s408_s0 }
   0x5   :  { %p322_p2 = pnand %p320_p1, %p317_p0 }
   0x7   :  { %325 = shalt.err (!%p322_p2)
}
   0x8   :  { %s326_s15 = scalar_lea.vmem %s14_s7, 17408  ;;  %p331_p4 = scmp.lt.s32.totalorder %s14_s7, %s14_s7 }
   0x9   :  { %p327_p3 = scmp.ne.s32.totalorder %s14_s7, %s326_s15  ;;  %p332_p5 = scmp.lt.s32.totalorder %s326_s15, %s326_s15 }
   0xb   :  { %p333_p6 = por %p332_p5, %p331_p4 }
   0xd   :  { %p334_p7 = pnand %p333_p6, %p327_p3 }
   0xf   :  { %337 = shalt.err (!%p334_p7)
}
  0x10   :  { %s365_s16 = smov 256   ;;  %s366_s17 = smov 16  }
  0x11   :  { %19 = dma.hbm_to_vmem [thread:$0]  %s408_s0, 17408, %s14_s7, [#allocation3], %s365_s16, %s365_s16, %s366_s17  }
  0x12   :  { %360 = dma.done.wait [#allocation3], 17408  }
  0x13   :  { %361 = vsyncadd [#allocation3], 4294949888  ;;  %v23_v0 = vld [vmem:[#allocation2] sm:$0xff]  ;;  %v24_v1 = vld [vmem:[#allocation2 + $0x8] sm:$0xff]  ;;  %s367_s0 = smov [#allocation5]  }
  0x14   :  { %v25_v2 = vld [vmem:[#allocation2 + $0x10] sm:$0xff]  ;;  %159 = vst [vmem:[#allocation5] sm:$0xff] %v23_v0  ;;  %160 = vst [vmem:[#allocation5 + $0x8] sm:$0xff] %v24_v1  ;;  %v26_v3 = vld [vmem:[#allocation2 + $0x18] sm:$0xff]  ;;  %s300_s20 = sshll.u32 %s367_s0, 4  ;;  %s301_s20 = int_to_ptr.vmem [resolvable:$true] %s300_s20 }
  0x15   :  { %161 = vst [vmem:[#allocation5 + $0x10] sm:$0xff] %v25_v2  ;;  %v27_v4 = vld [vmem:[#allocation2 + $0x20] sm:$0xff]  ;;  %v28_v5 = vld [vmem:[#allocation2 + $0x28] sm:$0xff]  ;;  %162 = vst [vmem:[#allocation5 + $0x18] sm:$0xff] %v26_v3  ;;  %s338_s21 = scalar_lea.vmem %s301_s20, 17408  ;;  %p343_p9 = scmp.lt.s32.totalorder %s301_s20, %s301_s20 }
  0x16   :  { %163 = vst [vmem:[#allocation5 + $0x20] sm:$0xff] %v27_v4  ;;  %164 = vst [vmem:[#allocation5 + $0x28] sm:$0xff] %v28_v5  ;;  %v29_v6 = vld [vmem:[#allocation2 + $0x30] sm:$0xff]  ;;  %v30_v7 = vld [vmem:[#allocation2 + $0x38] sm:$0xff]  ;;  %p339_p8 = scmp.ne.s32.totalorder %s301_s20, %s338_s21  ;;  %p344_p10 = scmp.lt.s32.totalorder %s338_s21, %s338_s21 }
  0x17   :  { %v31_v8 = vld [vmem:[#allocation2 + $0x40] sm:$0xff]  ;;  %165 = vst [vmem:[#allocation5 + $0x30] sm:$0xff] %v29_v6  ;;  %166 = vst [vmem:[#allocation5 + $0x38] sm:$0xff] %v30_v7  ;;  %v32_v9 = vld [vmem:[#allocation2 + $0x48] sm:$0xff] }
  0x18   :  { %167 = vst [vmem:[#allocation5 + $0x40] sm:$0xff] %v31_v8  ;;  %v33_v10 = vld [vmem:[#allocation2 + $0x50] sm:$0xff]  ;;  %v34_v11 = vld [vmem:[#allocation2 + $0x58] sm:$0xff]  ;;  %168 = vst [vmem:[#allocation5 + $0x48] sm:$0xff] %v32_v9  ;;  %p345_p11 = por %p344_p10, %p343_p9 }
  0x19   :  { %169 = vst [vmem:[#allocation5 + $0x50] sm:$0xff] %v33_v10  ;;  %170 = vst [vmem:[#allocation5 + $0x58] sm:$0xff] %v34_v11  ;;  %v35_v12 = vld [vmem:[#allocation2 + $0x60] sm:$0xff]  ;;  %v36_v13 = vld [vmem:[#allocation2 + $0x68] sm:$0xff] }
  0x1a   :  { %v37_v14 = vld [vmem:[#allocation2 + $0x70] sm:$0xff]  ;;  %171 = vst [vmem:[#allocation5 + $0x60] sm:$0xff] %v35_v12  ;;  %172 = vst [vmem:[#allocation5 + $0x68] sm:$0xff] %v36_v13  ;;  %v38_v15 = vld [vmem:[#allocation2 + $0x78] sm:$0xff]  ;;  %p346_p12 = pnand %p345_p11, %p339_p8 }
  0x1b   :  { %173 = vst [vmem:[#allocation5 + $0x70] sm:$0xff] %v37_v14  ;;  %v39_v16 = vld [vmem:[#allocation2 + $0x80] sm:$0xff]  ;;  %v40_v17 = vld [vmem:[#allocation2 + $0x88] sm:$0xff]  ;;  %174 = vst [vmem:[#allocation5 + $0x78] sm:$0xff] %v38_v15 }
  0x1c   :  { %175 = vst [vmem:[#allocation5 + $0x80] sm:$0xff] %v39_v16  ;;  %176 = vst [vmem:[#allocation5 + $0x88] sm:$0xff] %v40_v17  ;;  %v41_v18 = vld [vmem:[#allocation2 + $0x90] sm:$0xff]  ;;  %v42_v19 = vld [vmem:[#allocation2 + $0x98] sm:$0xff] }
  0x1d   :  { %v43_v20 = vld [vmem:[#allocation2 + $0xa0] sm:$0xff]  ;;  %177 = vst [vmem:[#allocation5 + $0x90] sm:$0xff] %v41_v18  ;;  %178 = vst [vmem:[#allocation5 + $0x98] sm:$0xff] %v42_v19  ;;  %v44_v21 = vld [vmem:[#allocation2 + $0xa8] sm:$0xff] }
  0x1e   :  { %179 = vst [vmem:[#allocation5 + $0xa0] sm:$0xff] %v43_v20  ;;  %v45_v22 = vld [vmem:[#allocation2 + $0xb0] sm:$0xff]  ;;  %v46_v23 = vld [vmem:[#allocation2 + $0xb8] sm:$0xff]  ;;  %180 = vst [vmem:[#allocation5 + $0xa8] sm:$0xff] %v44_v21 }
  0x1f   :  { %181 = vst [vmem:[#allocation5 + $0xb0] sm:$0xff] %v45_v22  ;;  %182 = vst [vmem:[#allocation5 + $0xb8] sm:$0xff] %v46_v23  ;;  %v47_v24 = vld [vmem:[#allocation2 + $0xc0] sm:$0xff]  ;;  %v48_v25 = vld [vmem:[#allocation2 + $0xc8] sm:$0xff] }
  0x20   :  { %v49_v26 = vld [vmem:[#allocation2 + $0xd0] sm:$0xff]  ;;  %183 = vst [vmem:[#allocation5 + $0xc0] sm:$0xff] %v47_v24  ;;  %184 = vst [vmem:[#allocation5 + $0xc8] sm:$0xff] %v48_v25  ;;  %v50_v27 = vld [vmem:[#allocation2 + $0xd8] sm:$0xff] }
  0x21   :  { %185 = vst [vmem:[#allocation5 + $0xd0] sm:$0xff] %v49_v26  ;;  %v51_v28 = vld [vmem:[#allocation2 + $0xe0] sm:$0xff]  ;;  %v52_v29 = vld [vmem:[#allocation2 + $0xe8] sm:$0xff]  ;;  %186 = vst [vmem:[#allocation5 + $0xd8] sm:$0xff] %v50_v27 }
  0x22   :  { %187 = vst [vmem:[#allocation5 + $0xe0] sm:$0xff] %v51_v28  ;;  %188 = vst [vmem:[#allocation5 + $0xe8] sm:$0xff] %v52_v29  ;;  %v53_v30 = vld [vmem:[#allocation2 + $0xf0] sm:$0xff]  ;;  %v54_v31 = vld [vmem:[#allocation2 + $0xf8] sm:$0xff] }
  0x23   :  { %v55_v32 = vld [vmem:[#allocation2 + $0x100] sm:$0xff]  ;;  %189 = vst [vmem:[#allocation5 + $0xf0] sm:$0xff] %v53_v30  ;;  %190 = vst [vmem:[#allocation5 + $0xf8] sm:$0xff] %v54_v31  ;;  %v56_v33 = vld [vmem:[#allocation2 + $0x108] sm:$0xff] }
  0x24   :  { %191 = vst [vmem:[#allocation5 + $0x100] sm:$0xff] %v55_v32  ;;  %v57_v34 = vld [vmem:[#allocation2 + $0x110] sm:$0xff]  ;;  %v58_v35 = vld [vmem:[#allocation2 + $0x118] sm:$0xff]  ;;  %192 = vst [vmem:[#allocation5 + $0x108] sm:$0xff] %v56_v33 }
  0x25   :  { %193 = vst [vmem:[#allocation5 + $0x110] sm:$0xff] %v57_v34  ;;  %194 = vst [vmem:[#allocation5 + $0x118] sm:$0xff] %v58_v35  ;;  %v59_v36 = vld [vmem:[#allocation2 + $0x120] sm:$0xff]  ;;  %v60_v37 = vld [vmem:[#allocation2 + $0x128] sm:$0xff] }
  0x26   :  { %v61_v38 = vld [vmem:[#allocation2 + $0x130] sm:$0xff]  ;;  %195 = vst [vmem:[#allocation5 + $0x120] sm:$0xff] %v59_v36  ;;  %196 = vst [vmem:[#allocation5 + $0x128] sm:$0xff] %v60_v37  ;;  %v62_v39 = vld [vmem:[#allocation2 + $0x138] sm:$0xff] }
  0x27   :  { %197 = vst [vmem:[#allocation5 + $0x130] sm:$0xff] %v61_v38  ;;  %v63_v40 = vld [vmem:[#allocation2 + $0x140] sm:$0xff]  ;;  %v64_v41 = vld [vmem:[#allocation2 + $0x148] sm:$0xff]  ;;  %198 = vst [vmem:[#allocation5 + $0x138] sm:$0xff] %v62_v39 }
  0x28   :  { %199 = vst [vmem:[#allocation5 + $0x140] sm:$0xff] %v63_v40  ;;  %200 = vst [vmem:[#allocation5 + $0x148] sm:$0xff] %v64_v41  ;;  %v65_v42 = vld [vmem:[#allocation2 + $0x150] sm:$0xff]  ;;  %v66_v43 = vld [vmem:[#allocation2 + $0x158] sm:$0xff] }
  0x29   :  { %v67_v44 = vld [vmem:[#allocation2 + $0x160] sm:$0xff]  ;;  %201 = vst [vmem:[#allocation5 + $0x150] sm:$0xff] %v65_v42  ;;  %202 = vst [vmem:[#allocation5 + $0x158] sm:$0xff] %v66_v43  ;;  %v68_v45 = vld [vmem:[#allocation2 + $0x168] sm:$0xff] }
  0x2a   :  { %203 = vst [vmem:[#allocation5 + $0x160] sm:$0xff] %v67_v44  ;;  %v69_v46 = vld [vmem:[#allocation2 + $0x170] sm:$0xff]  ;;  %v70_v47 = vld [vmem:[#allocation2 + $0x178] sm:$0xff]  ;;  %204 = vst [vmem:[#allocation5 + $0x168] sm:$0xff] %v68_v45 }
  0x2b   :  { %205 = vst [vmem:[#allocation5 + $0x170] sm:$0xff] %v69_v46  ;;  %206 = vst [vmem:[#allocation5 + $0x178] sm:$0xff] %v70_v47  ;;  %v71_v48 = vld [vmem:[#allocation2 + $0x180] sm:$0xff]  ;;  %v72_v49 = vld [vmem:[#allocation2 + $0x188] sm:$0xff] }
  0x2c   :  { %v73_v50 = vld [vmem:[#allocation2 + $0x190] sm:$0xff]  ;;  %207 = vst [vmem:[#allocation5 + $0x180] sm:$0xff] %v71_v48  ;;  %208 = vst [vmem:[#allocation5 + $0x188] sm:$0xff] %v72_v49  ;;  %v74_v51 = vld [vmem:[#allocation2 + $0x198] sm:$0xff] }
  0x2d   :  { %209 = vst [vmem:[#allocation5 + $0x190] sm:$0xff] %v73_v50  ;;  %v75_v52 = vld [vmem:[#allocation2 + $0x1a0] sm:$0xff]  ;;  %v76_v53 = vld [vmem:[#allocation2 + $0x1a8] sm:$0xff]  ;;  %210 = vst [vmem:[#allocation5 + $0x198] sm:$0xff] %v74_v51 }
  0x2e   :  { %211 = vst [vmem:[#allocation5 + $0x1a0] sm:$0xff] %v75_v52  ;;  %212 = vst [vmem:[#allocation5 + $0x1a8] sm:$0xff] %v76_v53  ;;  %v77_v54 = vld [vmem:[#allocation2 + $0x1b0] sm:$0xff]  ;;  %v78_v55 = vld [vmem:[#allocation2 + $0x1b8] sm:$0xff] }
  0x2f   :  { %v79_v56 = vld [vmem:[#allocation2 + $0x1c0] sm:$0xff]  ;;  %213 = vst [vmem:[#allocation5 + $0x1b0] sm:$0xff] %v77_v54  ;;  %214 = vst [vmem:[#allocation5 + $0x1b8] sm:$0xff] %v78_v55  ;;  %v80_v57 = vld [vmem:[#allocation2 + $0x1c8] sm:$0xff] }
  0x30   :  { %215 = vst [vmem:[#allocation5 + $0x1c0] sm:$0xff] %v79_v56  ;;  %v81_v58 = vld [vmem:[#allocation2 + $0x1d0] sm:$0xff]  ;;  %v82_v59 = vld [vmem:[#allocation2 + $0x1d8] sm:$0xff]  ;;  %216 = vst [vmem:[#allocation5 + $0x1c8] sm:$0xff] %v80_v57 }
  0x31   :  { %217 = vst [vmem:[#allocation5 + $0x1d0] sm:$0xff] %v81_v58  ;;  %218 = vst [vmem:[#allocation5 + $0x1d8] sm:$0xff] %v82_v59  ;;  %v83_v60 = vld [vmem:[#allocation2 + $0x1e0] sm:$0xff]  ;;  %v84_v61 = vld [vmem:[#allocation2 + $0x1e8] sm:$0xff] }
  0x32   :  { %v85_v62 = vld [vmem:[#allocation2 + $0x1f0] sm:$0xff]  ;;  %219 = vst [vmem:[#allocation5 + $0x1e0] sm:$0xff] %v83_v60  ;;  %220 = vst [vmem:[#allocation5 + $0x1e8] sm:$0xff] %v84_v61  ;;  %v86_v63 = vld [vmem:[#allocation2 + $0x1f8] sm:$0xff] }
  0x33   :  { %221 = vst [vmem:[#allocation5 + $0x1f0] sm:$0xff] %v85_v62  ;;  %v87_v0 = vld [vmem:[#allocation2 + $0x200] sm:$0xff]  ;;  %v88_v1 = vld [vmem:[#allocation2 + $0x208] sm:$0xff]  ;;  %222 = vst [vmem:[#allocation5 + $0x1f8] sm:$0xff] %v86_v63 }
  0x34   :  { %223 = vst [vmem:[#allocation5 + $0x200] sm:$0xff] %v87_v0  ;;  %224 = vst [vmem:[#allocation5 + $0x208] sm:$0xff] %v88_v1  ;;  %v89_v2 = vld [vmem:[#allocation2 + $0x210] sm:$0xff]  ;;  %v90_v3 = vld [vmem:[#allocation2 + $0x218] sm:$0xff] }
  0x35   :  { %v91_v4 = vld [vmem:[#allocation2 + $0x220] sm:$0xff]  ;;  %225 = vst [vmem:[#allocation5 + $0x210] sm:$0xff] %v89_v2  ;;  %226 = vst [vmem:[#allocation5 + $0x218] sm:$0xff] %v90_v3  ;;  %v92_v5 = vld [vmem:[#allocation2 + $0x228] sm:$0xff] }
  0x36   :  { %227 = vst [vmem:[#allocation5 + $0x220] sm:$0xff] %v91_v4  ;;  %v93_v6 = vld [vmem:[#allocation2 + $0x230] sm:$0xff]  ;;  %v94_v7 = vld [vmem:[#allocation2 + $0x238] sm:$0xff]  ;;  %228 = vst [vmem:[#allocation5 + $0x228] sm:$0xff] %v92_v5 }
  0x37   :  { %229 = vst [vmem:[#allocation5 + $0x230] sm:$0xff] %v93_v6  ;;  %230 = vst [vmem:[#allocation5 + $0x238] sm:$0xff] %v94_v7  ;;  %v95_v8 = vld [vmem:[#allocation2 + $0x240] sm:$0xff]  ;;  %v96_v9 = vld [vmem:[#allocation2 + $0x248] sm:$0xff] }
  0x38   :  { %v97_v10 = vld [vmem:[#allocation2 + $0x250] sm:$0xff]  ;;  %231 = vst [vmem:[#allocation5 + $0x240] sm:$0xff] %v95_v8  ;;  %232 = vst [vmem:[#allocation5 + $0x248] sm:$0xff] %v96_v9  ;;  %v98_v11 = vld [vmem:[#allocation2 + $0x258] sm:$0xff] }
  0x39   :  { %233 = vst [vmem:[#allocation5 + $0x250] sm:$0xff] %v97_v10  ;;  %v99_v12 = vld [vmem:[#allocation2 + $0x260] sm:$0xff]  ;;  %v100_v13 = vld [vmem:[#allocation2 + $0x268] sm:$0xff]  ;;  %234 = vst [vmem:[#allocation5 + $0x258] sm:$0xff] %v98_v11 }
  0x3a   :  { %235 = vst [vmem:[#allocation5 + $0x260] sm:$0xff] %v99_v12  ;;  %236 = vst [vmem:[#allocation5 + $0x268] sm:$0xff] %v100_v13  ;;  %v101_v14 = vld [vmem:[#allocation2 + $0x270] sm:$0xff]  ;;  %v102_v15 = vld [vmem:[#allocation2 + $0x278] sm:$0xff] }
  0x3b   :  { %v103_v16 = vld [vmem:[#allocation2 + $0x280] sm:$0xff]  ;;  %237 = vst [vmem:[#allocation5 + $0x270] sm:$0xff] %v101_v14  ;;  %238 = vst [vmem:[#allocation5 + $0x278] sm:$0xff] %v102_v15  ;;  %v104_v17 = vld [vmem:[#allocation2 + $0x288] sm:$0xff] }
  0x3c   :  { %239 = vst [vmem:[#allocation5 + $0x280] sm:$0xff] %v103_v16  ;;  %v105_v18 = vld [vmem:[#allocation2 + $0x290] sm:$0xff]  ;;  %v106_v19 = vld [vmem:[#allocation2 + $0x298] sm:$0xff]  ;;  %240 = vst [vmem:[#allocation5 + $0x288] sm:$0xff] %v104_v17 }
  0x3d   :  { %241 = vst [vmem:[#allocation5 + $0x290] sm:$0xff] %v105_v18  ;;  %242 = vst [vmem:[#allocation5 + $0x298] sm:$0xff] %v106_v19  ;;  %v107_v20 = vld [vmem:[#allocation2 + $0x2a0] sm:$0xff]  ;;  %v108_v21 = vld [vmem:[#allocation2 + $0x2a8] sm:$0xff] }
  0x3e   :  { %v109_v22 = vld [vmem:[#allocation2 + $0x2b0] sm:$0xff]  ;;  %243 = vst [vmem:[#allocation5 + $0x2a0] sm:$0xff] %v107_v20  ;;  %244 = vst [vmem:[#allocation5 + $0x2a8] sm:$0xff] %v108_v21  ;;  %v110_v23 = vld [vmem:[#allocation2 + $0x2b8] sm:$0xff] }
  0x3f   :  { %245 = vst [vmem:[#allocation5 + $0x2b0] sm:$0xff] %v109_v22  ;;  %v111_v24 = vld [vmem:[#allocation2 + $0x2c0] sm:$0xff]  ;;  %v112_v25 = vld [vmem:[#allocation2 + $0x2c8] sm:$0xff]  ;;  %246 = vst [vmem:[#allocation5 + $0x2b8] sm:$0xff] %v110_v23 }
  0x40   :  { %247 = vst [vmem:[#allocation5 + $0x2c0] sm:$0xff] %v111_v24  ;;  %248 = vst [vmem:[#allocation5 + $0x2c8] sm:$0xff] %v112_v25  ;;  %v113_v26 = vld [vmem:[#allocation2 + $0x2d0] sm:$0xff]  ;;  %v114_v27 = vld [vmem:[#allocation2 + $0x2d8] sm:$0xff] }
  0x41   :  { %v115_v28 = vld [vmem:[#allocation2 + $0x2e0] sm:$0xff]  ;;  %249 = vst [vmem:[#allocation5 + $0x2d0] sm:$0xff] %v113_v26  ;;  %250 = vst [vmem:[#allocation5 + $0x2d8] sm:$0xff] %v114_v27  ;;  %v116_v29 = vld [vmem:[#allocation2 + $0x2e8] sm:$0xff] }
  0x42   :  { %251 = vst [vmem:[#allocation5 + $0x2e0] sm:$0xff] %v115_v28  ;;  %v117_v30 = vld [vmem:[#allocation2 + $0x2f0] sm:$0xff]  ;;  %v118_v31 = vld [vmem:[#allocation2 + $0x2f8] sm:$0xff]  ;;  %252 = vst [vmem:[#allocation5 + $0x2e8] sm:$0xff] %v116_v29 }
  0x43   :  { %253 = vst [vmem:[#allocation5 + $0x2f0] sm:$0xff] %v117_v30  ;;  %254 = vst [vmem:[#allocation5 + $0x2f8] sm:$0xff] %v118_v31  ;;  %v119_v32 = vld [vmem:[#allocation2 + $0x300] sm:$0xff]  ;;  %v120_v33 = vld [vmem:[#allocation2 + $0x308] sm:$0xff] }
  0x44   :  { %v121_v34 = vld [vmem:[#allocation2 + $0x310] sm:$0xff]  ;;  %255 = vst [vmem:[#allocation5 + $0x300] sm:$0xff] %v119_v32  ;;  %256 = vst [vmem:[#allocation5 + $0x308] sm:$0xff] %v120_v33  ;;  %v122_v35 = vld [vmem:[#allocation2 + $0x318] sm:$0xff] }
  0x45   :  { %257 = vst [vmem:[#allocation5 + $0x310] sm:$0xff] %v121_v34  ;;  %v123_v36 = vld [vmem:[#allocation2 + $0x320] sm:$0xff]  ;;  %v124_v37 = vld [vmem:[#allocation2 + $0x328] sm:$0xff]  ;;  %258 = vst [vmem:[#allocation5 + $0x318] sm:$0xff] %v122_v35 }
  0x46   :  { %259 = vst [vmem:[#allocation5 + $0x320] sm:$0xff] %v123_v36  ;;  %260 = vst [vmem:[#allocation5 + $0x328] sm:$0xff] %v124_v37  ;;  %v125_v38 = vld [vmem:[#allocation2 + $0x330] sm:$0xff]  ;;  %v126_v39 = vld [vmem:[#allocation2 + $0x338] sm:$0xff] }
  0x47   :  { %v127_v40 = vld [vmem:[#allocation2 + $0x340] sm:$0xff]  ;;  %261 = vst [vmem:[#allocation5 + $0x330] sm:$0xff] %v125_v38  ;;  %262 = vst [vmem:[#allocation5 + $0x338] sm:$0xff] %v126_v39  ;;  %v128_v41 = vld [vmem:[#allocation2 + $0x348] sm:$0xff] }
  0x48   :  { %263 = vst [vmem:[#allocation5 + $0x340] sm:$0xff] %v127_v40  ;;  %v129_v42 = vld [vmem:[#allocation2 + $0x350] sm:$0xff]  ;;  %v130_v43 = vld [vmem:[#allocation2 + $0x358] sm:$0xff]  ;;  %264 = vst [vmem:[#allocation5 + $0x348] sm:$0xff] %v128_v41 }
  0x49   :  { %265 = vst [vmem:[#allocation5 + $0x350] sm:$0xff] %v129_v42  ;;  %266 = vst [vmem:[#allocation5 + $0x358] sm:$0xff] %v130_v43  ;;  %v131_v44 = vld [vmem:[#allocation2 + $0x360] sm:$0xff]  ;;  %v132_v45 = vld [vmem:[#allocation2 + $0x368] sm:$0xff] }
  0x4a   :  { %v133_v46 = vld [vmem:[#allocation2 + $0x370] sm:$0xff]  ;;  %267 = vst [vmem:[#allocation5 + $0x360] sm:$0xff] %v131_v44  ;;  %268 = vst [vmem:[#allocation5 + $0x368] sm:$0xff] %v132_v45  ;;  %v134_v47 = vld [vmem:[#allocation2 + $0x378] sm:$0xff] }
  0x4b   :  { %269 = vst [vmem:[#allocation5 + $0x370] sm:$0xff] %v133_v46  ;;  %v135_v48 = vld [vmem:[#allocation2 + $0x380] sm:$0xff]  ;;  %v136_v49 = vld [vmem:[#allocation2 + $0x388] sm:$0xff]  ;;  %270 = vst [vmem:[#allocation5 + $0x378] sm:$0xff] %v134_v47 }
  0x4c   :  { %271 = vst [vmem:[#allocation5 + $0x380] sm:$0xff] %v135_v48  ;;  %272 = vst [vmem:[#allocation5 + $0x388] sm:$0xff] %v136_v49  ;;  %v137_v50 = vld [vmem:[#allocation2 + $0x390] sm:$0xff]  ;;  %v138_v51 = vld [vmem:[#allocation2 + $0x398] sm:$0xff] }
  0x4d   :  { %v139_v52 = vld [vmem:[#allocation2 + $0x3a0] sm:$0xff]  ;;  %273 = vst [vmem:[#allocation5 + $0x390] sm:$0xff] %v137_v50  ;;  %274 = vst [vmem:[#allocation5 + $0x398] sm:$0xff] %v138_v51  ;;  %v140_v53 = vld [vmem:[#allocation2 + $0x3a8] sm:$0xff] }
  0x4e   :  { %275 = vst [vmem:[#allocation5 + $0x3a0] sm:$0xff] %v139_v52  ;;  %v141_v54 = vld [vmem:[#allocation2 + $0x3b0] sm:$0xff]  ;;  %v142_v55 = vld [vmem:[#allocation2 + $0x3b8] sm:$0xff]  ;;  %276 = vst [vmem:[#allocation5 + $0x3a8] sm:$0xff] %v140_v53 }
  0x4f   :  { %277 = vst [vmem:[#allocation5 + $0x3b0] sm:$0xff] %v141_v54  ;;  %278 = vst [vmem:[#allocation5 + $0x3b8] sm:$0xff] %v142_v55  ;;  %v143_v56 = vld [vmem:[#allocation2 + $0x3c0] sm:$0xff]  ;;  %v144_v57 = vld [vmem:[#allocation2 + $0x3c8] sm:$0xff] }
  0x50   :  { %v145_v58 = vld [vmem:[#allocation2 + $0x3d0] sm:$0xff]  ;;  %279 = vst [vmem:[#allocation5 + $0x3c0] sm:$0xff] %v143_v56  ;;  %280 = vst [vmem:[#allocation5 + $0x3c8] sm:$0xff] %v144_v57  ;;  %v146_v59 = vld [vmem:[#allocation2 + $0x3d8] sm:$0xff] }
  0x51   :  { %281 = vst [vmem:[#allocation5 + $0x3d0] sm:$0xff] %v145_v58  ;;  %v147_v60 = vld [vmem:[#allocation2 + $0x3e0] sm:$0xff]  ;;  %v148_v61 = vld [vmem:[#allocation2 + $0x3e8] sm:$0xff]  ;;  %282 = vst [vmem:[#allocation5 + $0x3d8] sm:$0xff] %v146_v59 }
  0x52   :  { %283 = vst [vmem:[#allocation5 + $0x3e0] sm:$0xff] %v147_v60  ;;  %284 = vst [vmem:[#allocation5 + $0x3e8] sm:$0xff] %v148_v61  ;;  %v149_v62 = vld [vmem:[#allocation2 + $0x3f0] sm:$0xff]  ;;  %v150_v63 = vld [vmem:[#allocation2 + $0x3f8] sm:$0xff] }
  0x53   :  { %v151_v0 = vld [vmem:[#allocation2 + $0x400] sm:$0xff]  ;;  %285 = vst [vmem:[#allocation5 + $0x3f0] sm:$0xff] %v149_v62  ;;  %286 = vst [vmem:[#allocation5 + $0x3f8] sm:$0xff] %v150_v63  ;;  %v152_v1 = vld [vmem:[#allocation2 + $0x408] sm:$0xff] }
  0x54   :  { %287 = vst [vmem:[#allocation5 + $0x400] sm:$0xff] %v151_v0  ;;  %v153_v2 = vld [vmem:[#allocation2 + $0x410] sm:$0xff]  ;;  %v154_v3 = vld [vmem:[#allocation2 + $0x418] sm:$0xff]  ;;  %288 = vst [vmem:[#allocation5 + $0x408] sm:$0xff] %v152_v1 }
  0x55   :  { %289 = vst [vmem:[#allocation5 + $0x410] sm:$0xff] %v153_v2  ;;  %290 = vst [vmem:[#allocation5 + $0x418] sm:$0xff] %v154_v3  ;;  %v155_v4 = vld [vmem:[#allocation2 + $0x420] sm:$0xff]  ;;  %v156_v5 = vld [vmem:[#allocation2 + $0x428] sm:$0xff] }
  0x56   :  { %v157_v6 = vld [vmem:[#allocation2 + $0x430] sm:$0x7]  ;;  %291 = vst [vmem:[#allocation5 + $0x420] sm:$0xff] %v155_v4  ;;  %292 = vst [vmem:[#allocation5 + $0x428] sm:$0xff] %v156_v5  ;;  %v158_v7 = vld [vmem:[#allocation2 + $0x438] sm:$0x7] }
  0x57   :  { %293 = vst [vmem:[#allocation5 + $0x430] sm:$0x7] %v157_v6  ;;  %294 = vst [vmem:[#allocation5 + $0x438] sm:$0x7] %v158_v7 }
  0x58   :  { %349 = shalt.err (!%p346_p12)
}
  0x59   :  { %s350_s24 = scalar_lea.hbm %s409_s1, 17408 }
  0x5a   :  { %p351_p13 = scmp.ne.s32.totalorder %s409_s1, %s350_s24  ;;  %p354_p0 = scmp.lt.u32.totalorder %s350_s24, %s409_s1 }
  0x5c   :  { %p356_p1 = pnand %p354_p0, %p351_p13 }
  0x5e   :  { %359 = shalt.err (!%p356_p1)
}
  0x5f   :  { %306 = dma.vmem_to_hbm [thread:$0]  %s301_s20, 17408, %s409_s1, [#allocation4], %s365_s16, %s365_s16, %s366_s17  }
  0x60   :  { %362 = dma.done.wait [#allocation4], 17408  }
  0x61   :  { %363 = vsyncadd [#allocation4], 4294949888 }
  0x62   :  { %310 = vsyncpa [#allocation3], 1 }
  0x63   :  { %311 = vsyncpa [#allocation4], 1 }

</bundles_post_ra>
